<compile_context>
chip_gen: v6e
topology: v6e:2x2x1
jax: 0.10.0
libtpu: 0.0.40
codegen_flags: <defaults>
</compile_context>

<pallas_src>
import functools
import math

import jax
import jax.numpy as jnp
from jax.experimental import pallas as pl
from jax.experimental.pallas import tpu as pltpu


def _add_pos_kernel(seq_lens_ref, x_ref, tab_ref, pos_ref, o_ref, *, masked):
    """Grid = (num_row_tiles, B).  x/o: (1, rt, C); tab/pos: (rt, C)."""
    if masked:
        valid = seq_lens_ref[pl.program_id(1)]              # SMEM scalar
        emb = jnp.where(pos_ref[...] >= valid, 0.0, tab_ref[...])
    else:
        emb = tab_ref[...]
    o_ref[...] = (x_ref[...] + emb).astype(o_ref.dtype)


def _build_table(seq_len, embedding_dim):
    """Unmasked positional table, already concatenated with itself -> (2*seq_len, D)."""
    half = embedding_dim // 2
    scale = math.log(10000.0) / (half - 1)
    inv_freq = jnp.exp(-scale * jnp.arange(half, dtype=jnp.float32))
    ang = jnp.arange(seq_len, dtype=jnp.float32)[:, None] * inv_freq[None, :]
    emb = jnp.concatenate([jnp.sin(ang), jnp.cos(ang)], axis=1)
    if embedding_dim % 2 == 1:  # trace-time specialization: no zero-col select otherwise
        emb = jnp.concatenate([emb, jnp.zeros((seq_len, 1), jnp.float32)], axis=1)
    return jnp.concatenate([emb, emb], axis=0)


def _row_tile(n_rows, n_cols, itemsize, budget_bytes=2 << 20):
    """Largest row tile (multiple of 8, dividing n_rows) fitting the VMEM budget."""
    if n_rows * n_cols * itemsize <= budget_bytes:
        return n_rows
    fitting = [rt for rt in range(8, n_rows, 8)
               if n_rows % rt == 0 and rt * n_cols * itemsize <= budget_bytes]
    return max(fitting) if fitting else n_rows


def sinusoidal_positional_embedding(x, seq_len, embedding_dim,
                                    pad=False, seq_lens=None):
    """x: (batch, 2*seq_len, embedding_dim).  Returns x + pos_embedding."""
    B, S2, D = x.shape
    assert S2 == 2 * seq_len and D == embedding_dim
    assert embedding_dim // 2 > 1, "embedding_dim too small (half_dim - 1 == 0)"

    # Lane-dense view: flatten (S2, D) into rows of 128 lanes when possible.
    N = S2 * D
    if N % 128 == 0:
        R, C = N // 128, 128
    else:
        R, C = S2, D

    table = _build_table(seq_len, embedding_dim).reshape(R, C)            # f32
    pos = jnp.broadcast_to(
        (jnp.arange(S2, dtype=jnp.int32) % seq_len)[:, None], (S2, D)
    ).reshape(R, C)                                                        # int32

    if pad:
        assert seq_lens is not None
        seq_lens_arr = jnp.asarray(seq_lens, dtype=jnp.int32)
    else:
        seq_lens_arr = jnp.full((B,), seq_len, dtype=jnp.int32)

    x_r = x.reshape(B, R, C)

    rt = _row_tile(R, C, 4)
    nr = R // rt

    kernel = functools.partial(_add_pos_kernel, masked=bool(pad))

    out = pl.pallas_call(
        kernel,
        out_shape=jax.ShapeDtypeStruct((B, R, C), x.dtype),
        grid_spec=pltpu.PrefetchScalarGridSpec(
            num_scalar_prefetch=1,                 # seq_lens -> SMEM
            grid=(nr, B),                          # batch innermost: table/pos revisited
            in_specs=[
                pl.BlockSpec((1, rt, C), lambda r, b, sl: (b, r, 0)),   # x
                pl.BlockSpec((rt, C),    lambda r, b, sl: (r, 0)),      # table (cached)
                pl.BlockSpec((rt, C),    lambda r, b, sl: (r, 0)),      # pos   (cached)
            ],
            out_specs=pl.BlockSpec((1, rt, C), lambda r, b, sl: (b, r, 0)),
        ),
        input_output_aliases={1: 0},               # x (after the scalar-prefetch arg) -> out
        compiler_params=pltpu.CompilerParams(
            dimension_semantics=("parallel", "parallel"),
            vmem_limit_bytes=64 * 1024 * 1024),
    )(seq_lens_arr, x_r, table, pos)

    return out.reshape(B, S2, D)


# ----------------------------- pure-JAX reference ---------------------------
def _ref_get_embedding(seq_len, embedding_dim, pad_start=None):
    half = embedding_dim // 2
    e = math.log(10000.0) / (half - 1)
    e = jnp.exp(jnp.arange(half, dtype=jnp.float32) * -e)
    e = jnp.arange(seq_len, dtype=jnp.float32)[:, None] * e[None, :]
    e = jnp.concatenate([jnp.sin(e), jnp.cos(e)], axis=1)
    if embedding_dim % 2 == 1:
        e = jnp.concatenate([e, jnp.zeros((seq_len, 1), jnp.float32)], axis=1)
    if pad_start is not None:
        rows = jnp.arange(seq_len)[:, None]
        e = jnp.where(rows >= pad_start, 0.0, e)
    return e


def _ref_forward(x, seq_len, embedding_dim, pad=False, seq_lens=None):
    outs = []
    for idx in range(x.shape[0]):
        ps = seq_lens[idx] if pad else None
        pe = _ref_get_embedding(seq_len, embedding_dim, pad_start=ps)
        pe = jnp.concatenate([pe, pe], axis=0)
        outs.append(x[idx] + pe)
    return jnp.stack(outs, axis=0)


# ---------------------------------- main ------------------------------------
if __name__ == "__main__":
    batch, seq_len, embedding_dim = 2, 8, 32
    key = jax.random.PRNGKey(0)
    x = jax.random.normal(key, (batch, 2 * seq_len, embedding_dim),
                          dtype=jnp.float32)

    # pad=False path
    out = sinusoidal_positional_embedding(x, seq_len, embedding_dim, pad=False)
    out = jax.block_until_ready(out)
    ref = _ref_forward(x, seq_len, embedding_dim, pad=False)
    assert jnp.allclose(out, ref, atol=1e-5, rtol=1e-5)

    # pad=True path (per-batch valid lengths)
    seq_lens = [5, 8]
    out_p = sinusoidal_positional_embedding(x, seq_len, embedding_dim,
                                            pad=True, seq_lens=seq_lens)
    out_p = jax.block_until_ready(out_p)
    ref_p = _ref_forward(x, seq_len, embedding_dim, pad=True, seq_lens=seq_lens)
    assert jnp.allclose(out_p, ref_p, atol=1e-5, rtol=1e-5)

    print("KERNEL_OK")
</pallas_src>

<mosaic_0001>
module attributes {stable_mosaic.version = 11 : i64} {
  func.func @_add_pos_kernel(%arg0: i32, %arg1: i32, %arg2: memref<2xi32, #tpu.memory_space<smem>>, %arg3: memref<1x4x128xf32, #tpu.memory_space<vmem>>, %arg4: memref<4x128xf32, #tpu.memory_space<vmem>>, %arg5: memref<4x128xi32, #tpu.memory_space<vmem>>, %arg6: memref<1x4x128xf32, #tpu.memory_space<vmem>>) attributes {dimension_semantics = [#tpu.dimension_semantics<parallel>, #tpu.dimension_semantics<parallel>], iteration_bounds = array<i64: 1, 2>, scalar_prefetch = 1 : i64, scratch_operands = 0 : i64, tpu.core_type = #tpu.core_type<tc>, window_params = [{transform_indices = @transform_0, window_bounds = array<i64: 1, 4, 128>}, {transform_indices = @transform_1, window_bounds = array<i64: 4, 128>}, {transform_indices = @transform_2, window_bounds = array<i64: 4, 128>}, {transform_indices = @transform_3, window_bounds = array<i64: 1, 4, 128>}]} {
    %c0 = arith.constant 0 : index
    %c0_0 = arith.constant 0 : index
    %0 = vector.load %arg4[%c0, %c0_0] : memref<4x128xf32, #tpu.memory_space<vmem>>, vector<4x128xf32>
    %c0_1 = arith.constant 0 : index
    %c0_2 = arith.constant 0 : index
    %c0_3 = arith.constant 0 : index
    %1 = vector.load %arg3[%c0_1, %c0_2, %c0_3] : memref<1x4x128xf32, #tpu.memory_space<vmem>>, vector<1x4x128xf32>
    %2 = vector.shape_cast %0 : vector<4x128xf32> to vector<1x4x128xf32>
    %3 = arith.addf %1, %2 : vector<1x4x128xf32>
    %c0_4 = arith.constant 0 : index
    %c0_5 = arith.constant 0 : index
    %c0_6 = arith.constant 0 : index
    %4 = vector.load %arg6[%c0_4, %c0_5, %c0_6] : memref<1x4x128xf32, #tpu.memory_space<vmem>>, vector<1x4x128xf32>
    tpu.vector_store %arg6[%c0_4, %c0_5, %c0_6], %3 {strides = array<i32>} : memref<1x4x128xf32, #tpu.memory_space<vmem>>, vector<1x4x128xf32>,
    return
  }
  func.func @transform_0(%arg0: i32, %arg1: i32, %arg2: memref<2xi32, #tpu.memory_space<smem>>) -> (i32, i32, i32) {
    %c0_i32 = arith.constant 0 : i32
    %c0_i32_0 = arith.constant 0 : i32
    return %arg1, %arg0, %c0_i32 : i32, i32, i32
  }
  func.func @transform_1(%arg0: i32, %arg1: i32, %arg2: memref<2xi32, #tpu.memory_space<smem>>) -> (i32, i32) {
    %c0_i32 = arith.constant 0 : i32
    %c0_i32_0 = arith.constant 0 : i32
    return %arg0, %c0_i32 : i32, i32
  }
  func.func @transform_2(%arg0: i32, %arg1: i32, %arg2: memref<2xi32, #tpu.memory_space<smem>>) -> (i32, i32) {
    %c0_i32 = arith.constant 0 : i32
    %c0_i32_0 = arith.constant 0 : i32
    return %arg0, %c0_i32 : i32, i32
  }
  func.func @transform_3(%arg0: i32, %arg1: i32, %arg2: memref<2xi32, #tpu.memory_space<smem>>) -> (i32, i32, i32) {
    %c0_i32 = arith.constant 0 : i32
    %c0_i32_0 = arith.constant 0 : i32
    return %arg1, %arg0, %c0_i32 : i32, i32, i32
  }
}

</mosaic_0001>

<bundles_post_ra>
// kernel: tpu_custom_call.1
= control target key start
LH: loop header
LB: loop body
LE: loop exit
PB: predicated region body
PF: predicated region fallthrough
CT: control target
= control target key end

     0   :  { %s743_s0 = inlined_call_operand.vmem [shape: s32[2], index: 0, kind: input, shape index: {}]   ;;  %s744_s1 = inlined_call_operand.hbm [shape: f32[2,4,128], index: 1, kind: input, shape index: {}, may-alias: {1,4}]   ;;  %s745_s2 = inlined_call_operand.vmem [shape: f32[4,128], index: 2, kind: input, shape index: {}]   ;;  %s746_s3 = inlined_call_operand.vmem [shape: s32[4,128], index: 3, kind: input, shape index: {}]   ;;  %s747_s4 = inlined_call_operand.hbm [shape: f32[2,4,128], index: 4, kind: output, shape index: {}, may-alias: {1,4}]  }
   0x1   :  { %s9_s17 = sshll.u32 %s743_s0, 4  ;;  %s10_s17 = int_to_ptr.vmem [resolvable:$true] %s9_s17 }
   0x2   :  { %s451_s18 = scalar_lea.vmem %s10_s17, 16  ;;  %p456_p1 = scmp.lt.s32.totalorder %s10_s17, %s10_s17 }
   0x3   :  { %p452_p0 = scmp.ne.s32.totalorder %s10_s17, %s451_s18  ;;  %p457_p2 = scmp.lt.s32.totalorder %s451_s18, %s451_s18 }
   0x5   :  { %p458_p3 = por %p457_p2, %p456_p1 }
   0x7   :  { %p459_p4 = pnand %p458_p3, %p452_p0 }
   0x9   :  { %462 = shalt.err (!%p459_p4)  }
   0xa   :  { %s575_s19 = smov [#allocation3]  }
   0xb   :  { %12 = dma.vmem_to_smem %s10_s17, 16, %s575_s19, [#allocation2] }
   0xc   :  { %541 = dma.done.wait [#allocation2], 16 }
   0xd   :  { %542 = vsyncadd [#allocation2], 4294967280 }
   0xe   :  { %14 = sfence }
   0xf   :  { %15 = vsyncpa [#allocation5], 0 }
  0x10   :  { %17 = vsyncpa [#allocation5 + $0x1], 0 }
  0x11   :  { %18 = vsyncpa [#allocation6], 0 }
  0x12   :  { %20 = vsyncpa [#allocation6 + $0x1], 0  ;;  %s606_s3 = smov 0   ;;  %s608_s0 = smov 0  }
  0x13   :  { %s610_s20 = smov 0   ;;  %s612_s21 = smov 0  }
  0x14   :  { %s614_s22 = smov 0   ;;  %s616_s23 = smov 0  }
  0x15 LB: > { %s373_s24 = sadd.s32 4294967295, %s573_s23   ;;  %s374_s25 = sadd.s32 4294967294, %s573_s23   ;;  %s573_s23 = sphi %s616_s23, %s26_s23   ;;  %s569_s22 = sphi %s614_s22, %s759_s22   ;;  %s565_s21 = sphi %s612_s21, %s758_s21   ;;  %s561_s20 = sphi %s610_s20, %s757_s20   ;;  %s557_s0 = sphi %s608_s0, %s756_s0   ;;  %s553_s3 = sphi %s606_s3, %s755_s3  }
  0x16   : > { %s35_s26 = sadd.s32 1, %s569_s22  ;;  %s47_s27 = sadd.s32 1, %s561_s20 }
  0x17   : > { %p36_p5 = scmp.ge.s32.totalorder %s35_s26, 2  ;;  %p54_p6 = scmp.ne.s32.totalorder %s561_s20, %s557_s0 }
  0x18   : > { %p55_p7 = scmp.eq.s32.totalorder %s573_s23, 0  ;;  %p60_p8 = scmp.ne.s32.totalorder %s557_s0, %s553_s3 }
  0x19   : > { %s761_s26 = smov (%p36_p5, %s35_s26), 0  ;;  %p61_p10 = scmp.eq.s32.totalorder %s373_s24, 0 }
  0x1a   : > { %p647_p9 = por %p55_p7, %p54_p6  ;;  %s42_s29 = ssub.s32 %s569_s22, %s761_s26 }
  0x1b   : > { %p138_p11 = scmp.eq.s32.totalorder %s373_s24, 1  ;;  %p45_p12 = scmp.eq.s32.totalorder %s42_s29, 0 }
  0x1c   : > { %p653_p13 = por %p61_p10, %p60_p8  ;;  %p144_p1 = scmp.eq.s32.totalorder %s374_s25, 1 }
  0x1d   : > { %p657_p0 = por %p138_p11, %p54_p6  ;;  %p400_p4 = scmp.lt.s32.totalorder %s573_s23, 2 }
  0x1e   : > { %s662_s6 = scalar_select %p45_p12, %s561_s20, %s47_s27  }
  0x1f   : > { %p664_p2 = por %p144_p1, %p60_p8  ;;  %s178_s8 = sand.u32 1, %s561_s20  }
  0x20   : > { %s379_s9 = sshll.u32 %s178_s8, 2  ;;  %s380_s10 = sshll.u32 %s569_s22, 6 }
  0x21   : > { %s751_s7 = scalar_select %p664_p2, 1, 0 }
  0x22   : > { %s188_s13 = scalar_lea.hbm %s744_s1, %s380_s10  ;;  %s182_s14 = scalar_lea.vmem [#allocation4], %s379_s9 }
  0x23   : > { %s190_s15 = sshll.u32 %s182_s14, 4  ;;  %p677_p5 = pnand %p400_p4, %p647_p9  ;;  %s191_s15 = int_to_ptr.vmem [resolvable:$true] %s190_s15 }
  0x24   : > { %p381_p6 = scmp.ge.s32.totalorder %s573_s23, 1  ;;  %p195_p7 = scmp.lt.s32.totalorder %s573_s23, 3 }
  0x25   : > { %s179_s17 = scalar_lea.sflag [#allocation5], %s178_s8  ;;  %p465_p8 = pneg %p677_p5 }
  0x26   : > { %s476_s18 = scalar_lea.vmem %s191_s15, 64  ;;  %s576_s19 = smov [#allocation4]  }
  0x27   : > { %p477_p10 = scmp.ne.s32.totalorder %s191_s15, %s476_s18  ;;  %s481_s24 = sshll.u32 %s576_s19, 4  ;;  %s482_s24 = int_to_ptr.vmem [resolvable:$false] %s481_s24 }
  0x28   : > { %s483_s25 = scalar_lea.vmem %s482_s24, 128  ;;  %p484_p1 = scmp.lt.s32.totalorder %s191_s15, %s482_s24 }
  0x29   : > { %p479_p11 = pnand %p477_p10, %p465_p8  ;;  %p485_p3 = scmp.lt.s32.totalorder %s483_s25, %s476_s18 }
  0x2b   : > { %p480_p12 = pneg %p479_p11  ;;  %p486_p9 = por %p485_p3, %p484_p1 }
  0x2d   : > { %p487_p4 = pnand %p486_p9, %p480_p12 }
  0x2f   : > { %490 = shalt.err (!%p487_p4)
}
  0x30   : > { %395 = dma.hbm_to_vmem [thread:$0]  (!%p677_p5), %s188_s13, 64, %s191_s15, %s179_s17  }
  0x31   : > { %p196_p2 = pnand %p381_p6, %p195_p7 }
  0x32   : > { %s692_s27 = sand.u32 (!%p196_p2), 1, %s557_s0  }
  0x33   : > { %199 = sbr.rel (%p196_p2) target bundleno = 81 (0x51), region = 32  ;;  %s382_s28 = sshll.u32 (!%p196_p2), %s692_s27, 2 }
  0x34   : > { %s202_s29 = scalar_lea.sflag (!%p196_p2), [#allocation5], %s692_s27  ;;  %s205_s8 = scalar_lea.vmem (!%p196_p2), [#allocation4], %s382_s28 }
  0x38   : > { %544 = dma.done.wait (%p653_p13), %s202_s29, 64  }
  0x39   : > { %546 = vsyncadd (%p653_p13), %s202_s29, 4294967232  ;;  %s235_s9 = scalar_lea.vmem [#allocation7], %s382_s28  ;;  %s385_s11 = sshll.u32 %s565_s21, 6  ;;  %v244_v0 = vld [vmem:[%s745_s2] sm:$0xf] }
  0x3a   : > { %s263_s10 = sshll.u32 %s235_s9, 4  ;;  %v245_v1 = vld [vmem:[%s205_s8] sm:$0xf]  ;;  %s261_s16 = scalar_lea.hbm %s747_s4, %s385_s11  ;;  %s264_s10 = int_to_ptr.vmem [resolvable:$true] %s263_s10 }
  0x3b   : > { %v246_v2 = vadd.f32 %v245_v1, %v244_v0  ;;  %s249_s30 = scalar_lea.sflag [#allocation6], %s692_s27  ;;  %s491_s17 = scalar_lea.vmem %s264_s10, 64 }
  0x3c   : > { %p492_p13 = scmp.ne.s32.totalorder %s264_s10, %s491_s17  ;;  %s577_s18 = smov [#allocation7]  }
  0x3d   : > { %247 = vst [vmem:[%s235_s9] sm:$0xf] %v246_v2  ;;  %s495_s21 = sshll.u32 %s577_s18, 4  ;;  %s496_s21 = int_to_ptr.vmem [resolvable:$false] %s495_s21 }
  0x3e   : > { %p493_p2 = pnand %p492_p13, %p657_p0  ;;  %s497_s19 = scalar_lea.vmem %s496_s21, 128 }
  0x3f   : > { %p498_p5 = scmp.lt.s32.totalorder %s264_s10, %s496_s21  ;;  %p499_p6 = scmp.lt.s32.totalorder %s497_s19, %s491_s17 }
  0x40   : > { %p494_p3 = pneg %p493_p2 }
  0x41   : > { %p500_p7 = por %p499_p6, %p498_p5 }
  0x43   : > { %p501_p8 = pnand %p500_p7, %p494_p3 }
  0x45   : > { %504 = shalt.err (!%p501_p8)
}
  0x46   : > { %s505_s24 = scalar_lea.hbm %s261_s16, 64  ;;  %s509_s28 = scalar_lea.hbm %s747_s4, 128 }
  0x47   : > { %p506_p10 = scmp.ne.s32.totalorder %s261_s16, %s505_s24  ;;  %p510_p1 = scmp.lt.s32.totalorder %s261_s16, %s747_s4 }
  0x48   : > { %p511_p9 = scmp.lt.s32.totalorder %s509_s28, %s505_s24 }
  0x49   : > { %p507_p11 = pnand %p506_p10, %p657_p0 }
  0x4a   : > { %p512_p4 = por %p511_p9, %p510_p1 }
  0x4b   : > { %p508_p12 = pneg %p507_p11 }
  0x4d   : > { %p513_p13 = pnand %p512_p4, %p508_p12 }
  0x4f   : > { %516 = shalt.err (!%p513_p13)
}
  0x50   : > { %390 = dma.vmem_to_hbm [thread:$0]  (%p657_p0), %s264_s10, 64, %s261_s16, %s249_s30  }
  0x51 PF: > { %s275_s9 = sand.u32 1, %s553_s3   ;;  %p753_p2 = scmp.ne.s32.totalorder %s751_s7, 0 }
  0x52   : > { %p754_p3 = scmp.ge.s32.totalorder %s573_s23, 2  ;;  %s276_s11 = scalar_lea.sflag [#allocation6], %s275_s9 }
  0x54   : > { %p397_p5 = pnand %p754_p3, %p753_p2 }
  0x56   : > { %p398_p6 = pneg %p397_p5 }
  0x58   : > { %548 = dma.done.wait (%p398_p6), %s276_s11, 64  }
  0x59   : > { %550 = vsyncadd (%p398_p6), %s276_s11, 4294967232  ;;  %s26_s23 = sadd.s32 1, %s573_s23   ;;  %s755_s3 = smov %s557_s0 }
  0x5a   : > { %p23_p7 = scmp.ge.s32.totalorder %s26_s23, 4   ;;  %s756_s0 = smov %s561_s20 }
  0x5b   : > { %s757_s20 = smov %s662_s6  ;;  %s758_s21 = smov %s569_s22 }
  0x5c   : > { %s759_s22 = smov %s761_s26  ;;  %25 = sbr.rel (!%p23_p7) target bundleno = 21 (0x15), region = 83 }
  0x61   :  { %281 = vsyncpa [#allocation5], 1 }
  0x62   :  { %283 = vsyncpa [#allocation5 + $0x1], 1 }
  0x63   :  { %284 = vsyncpa [#allocation6], 1 }
  0x64   :  { %286 = vsyncpa [#allocation6 + $0x1], 1 }

</bundles_post_ra>
